<compile_context>
chip_gen: v7x
topology: tpu7x:2x2x1
jax: 0.10.0
libtpu: 0.0.40
codegen_flags: <defaults>
</compile_context>

<pallas_src>
import functools
import math

import jax
import jax.numpy as jnp
from jax.experimental import pallas as pl
from jax.experimental.pallas import tpu as pltpu


def rbf_loss_kernel(out_ref, tgt_ref, part_ref, *, j, true_b, tile_b):
    """One batch tile: out_ref (C, TILE_B), tgt_ref (1, TILE_B) -> part_ref (1, TILE_B)."""
    pid = pl.program_id(0)

    x = out_ref[...].astype(jnp.float32)      # (C, TILE_B) lane-dense
    tgt = tgt_ref[...]                        # (1, TILE_B) int32
    C, TB = x.shape

    # Gather of the correct-class score: select-then-reduce over the class
    # (sublane) axis.  No int->f32 cast, no elementwise multiply.
    class_idx = jax.lax.broadcasted_iota(jnp.int32, (C, TB), 0)
    correct = jnp.sum(jnp.where(class_idx == tgt, x, 0.0),
                      axis=0, keepdims=True)                      # (1, TILE_B)

    # log(exp(-j) + sum_c exp(-outputs)) — class reduction is a cheap sublane sum.
    sum_exp = jnp.sum(jnp.exp(-x), axis=0, keepdims=True)         # (1, TILE_B)
    per_col = jnp.log(jnp.float32(math.exp(-j)) + sum_exp) + correct

    # Mask out padded batch columns of the final tile.
    col = jax.lax.broadcasted_iota(jnp.int32, (1, TB), 1) + pid * tile_b
    part_ref[...] = jnp.where(col < true_b, per_col, 0.0)


def rbf_loss(outputs, targets, rubbish_penalty, *, tile_b=512):
    """outputs: (B, C) float, targets: (B,) int -> scalar float32 loss."""
    B, C = outputs.shape
    num_tiles = (B + tile_b - 1) // tile_b
    b_pad = num_tiles * tile_b

    # Lane-dense layout: classes on sublanes, batch on lanes.
    x = outputs.T                                      # (C, B), keep input dtype
    tgt = targets.astype(jnp.int32)
    if b_pad != B:
        x = jnp.pad(x, ((0, 0), (0, b_pad - B)))       # zero-padded -> exp stays finite
        tgt = jnp.pad(tgt, (0, b_pad - B))
    tgt2d = tgt.reshape(1, b_pad)

    kernel = functools.partial(
        rbf_loss_kernel, j=float(rubbish_penalty), true_b=B, tile_b=tile_b)

    partials = pl.pallas_call(
        kernel,
        out_shape=jax.ShapeDtypeStruct((1, b_pad), jnp.float32),
        grid=(num_tiles,),
        in_specs=[
            pl.BlockSpec((C, tile_b), lambda i: (0, i)),   # (C, TILE_B) outputs tile
            pl.BlockSpec((1, tile_b), lambda i: (0, i)),   # (1, TILE_B) targets tile
        ],
        out_specs=pl.BlockSpec((1, tile_b), lambda i: (0, i)),
        compiler_params=pltpu.CompilerParams(
            dimension_semantics=("parallel",)),            # shardable across TCs
    )(x, tgt2d)

    # Tiny wrapper-side reduction over B_pad floats; divide by the *true* B.
    return jnp.sum(partials) / jnp.float32(B)


def rbf_loss_ref(outputs, targets, rubbish_penalty):
    """Pure-JAX reference mirroring the PyTorch forward."""
    B = outputs.shape[0]
    correct = outputs[jnp.arange(B), targets]
    log_term = jnp.log(jnp.exp(-jnp.float32(rubbish_penalty))
                       + jnp.sum(jnp.exp(-outputs.astype(jnp.float32)), axis=1))
    return jnp.mean(log_term + correct)


if __name__ == "__main__":
    # Deterministic synthetic inputs: LeNet-5 RBF-layer outputs, 10 digit classes.
    B, C = 8, 10
    rubbish_penalty = 0.1  # self.j in the PyTorch module

    key = jax.random.PRNGKey(0)
    k_out, k_tgt = jax.random.split(key)
    outputs = jax.random.normal(k_out, (B, C), dtype=jnp.float32)
    targets = jax.random.randint(k_tgt, (B,), 0, C, dtype=jnp.int32)

    loss = jax.block_until_ready(rbf_loss(outputs, targets, rubbish_penalty))
    ref = jax.block_until_ready(rbf_loss_ref(outputs, targets, rubbish_penalty))

    assert jnp.allclose(loss, ref, rtol=1e-5, atol=1e-5), (loss, ref)
    print("KERNEL_OK")
</pallas_src>

<mosaic_0001>
module attributes {stable_mosaic.version = 11 : i64} {
  func.func @rbf_loss_kernel(%arg0: i32, %arg1: memref<10x512xf32, #tpu.memory_space<vmem>>, %arg2: memref<1x512xi32, #tpu.memory_space<vmem>>, %arg3: memref<1x512xf32, #tpu.memory_space<vmem>>) attributes {dimension_semantics = [#tpu.dimension_semantics<parallel>], iteration_bounds = array<i64: 1>, scalar_prefetch = 0 : i64, scratch_operands = 0 : i64, tpu.core_type = #tpu.core_type<tc>, window_params = [{transform_indices = @transform_0, window_bounds = array<i64: 10, 512>}, {transform_indices = @transform_1, window_bounds = array<i64: 1, 512>}, {transform_indices = @transform_2, window_bounds = array<i64: 1, 512>}]} {
    %c0 = arith.constant 0 : index
    %c0_0 = arith.constant 0 : index
    %0 = vector.load %arg1[%c0, %c0_0] : memref<10x512xf32, #tpu.memory_space<vmem>>, vector<10x512xf32>
    %c0_1 = arith.constant 0 : index
    %c0_2 = arith.constant 0 : index
    %1 = vector.load %arg2[%c0_1, %c0_2] : memref<1x512xi32, #tpu.memory_space<vmem>>, vector<1x512xi32>
    %2 = tpu.iota {dimensions = array<i32: 0>} : vector<10x512xi32>
    %3 = vector.broadcast %1 : vector<1x512xi32> to vector<10x512xi32>
    %4 = arith.cmpi eq, %2, %3 : vector<10x512xi32>
    %cst = arith.constant 0.000000e+00 : f32
    %5 = vector.broadcast %cst : f32 to vector<10x512xf32>
    %6 = arith.select %4, %0, %5 : vector<10x512xi1>, vector<10x512xf32>
    %cst_3 = arith.constant dense<0.000000e+00> : vector<512xf32>
    %7 = vector.multi_reduction <add>, %6, %cst_3 [0] : vector<10x512xf32> to vector<512xf32>
    %8 = vector.shape_cast %7 : vector<512xf32> to vector<1x512xf32>
    %cst_4 = arith.constant 0.000000e+00 : f32
    %9 = vector.broadcast %cst_4 : f32 to vector<10x512xf32>
    %10 = arith.subf %9, %0 : vector<10x512xf32>
    %11 = math.exp %10 : vector<10x512xf32>
    %cst_5 = arith.constant dense<0.000000e+00> : vector<512xf32>
    %12 = vector.multi_reduction <add>, %11, %cst_5 [0] : vector<10x512xf32> to vector<512xf32>
    %13 = vector.shape_cast %12 : vector<512xf32> to vector<1x512xf32>
    %cst_6 = arith.constant 0.904837429 : f32
    %14 = vector.broadcast %cst_6 : f32 to vector<1x512xf32>
    %15 = arith.addf %14, %13 : vector<1x512xf32>
    %16 = math.log %15 : vector<1x512xf32>
    %17 = arith.addf %16, %8 : vector<1x512xf32>
    %18 = tpu.iota {dimensions = array<i32: 1>} : vector<1x512xi32>
    %c512_i32 = arith.constant 512 : i32
    %19 = arith.muli %arg0, %c512_i32 : i32
    %20 = vector.broadcast %19 : i32 to vector<1x512xi32>
    %21 = arith.addi %18, %20 : vector<1x512xi32>
    %c8_i32 = arith.constant 8 : i32
    %22 = vector.broadcast %c8_i32 : i32 to vector<1x512xi32>
    %23 = arith.cmpi slt, %21, %22 : vector<1x512xi32>
    %cst_7 = arith.constant 0.000000e+00 : f32
    %24 = vector.broadcast %cst_7 : f32 to vector<1x512xf32>
    %25 = arith.select %23, %17, %24 : vector<1x512xi1>, vector<1x512xf32>
    %c0_8 = arith.constant 0 : index
    %c0_9 = arith.constant 0 : index
    %26 = vector.load %arg3[%c0_8, %c0_9] : memref<1x512xf32, #tpu.memory_space<vmem>>, vector<1x512xf32>
    tpu.vector_store %arg3[%c0_8, %c0_9], %25 {strides = array<i32>} : memref<1x512xf32, #tpu.memory_space<vmem>>, vector<1x512xf32>,
    return
  }
  func.func @transform_0(%arg0: i32) -> (i32, i32) {
    %c0_i32 = arith.constant 0 : i32
    %c0_i32_0 = arith.constant 0 : i32
    return %c0_i32, %arg0 : i32, i32
  }
  func.func @transform_1(%arg0: i32) -> (i32, i32) {
    %c0_i32 = arith.constant 0 : i32
    %c0_i32_0 = arith.constant 0 : i32
    return %c0_i32, %arg0 : i32, i32
  }
  func.func @transform_2(%arg0: i32) -> (i32, i32) {
    %c0_i32 = arith.constant 0 : i32
    %c0_i32_0 = arith.constant 0 : i32
    return %c0_i32, %arg0 : i32, i32
  }
}

</mosaic_0001>

<bundles_post_ra>
// kernel: tpu_custom_call.1
= control target key start
LH: loop header
LB: loop body
LE: loop exit
PB: predicated region body
PF: predicated region fallthrough
CT: control target
= control target key end

     0   :  { %7 = vsyncpa [#allocation3], 0  ;;  %s399_s0 = inlined_call_operand.hbm [shape: f32[10,512], index: 0, kind: input, shape index: {}]   ;;  %s400_s1 = inlined_call_operand.hbm [shape: s32[1,512], index: 1, kind: input, shape index: {}]   ;;  %s401_s2 = inlined_call_operand.hbm [shape: f32[1,512], index: 2, kind: output, shape index: {}]  }
   0x1   :  { %8 = vsyncpa [#allocation6], 0 }
   0x2   :  { %9 = vsyncpa [#allocation4], 0  ;;  %s341_s9 = smov [#allocation2]   ;;  %s269_s13 = scalar_lea.hbm %s399_s0, 1024 }
   0x3   :  { %s15_s10 = sshll.u32 %s341_s9, 4  ;;  %p270_p0 = scmp.ne.s32.totalorder %s399_s0, %s269_s13  ;;  %s16_s10 = int_to_ptr.vmem [resolvable:$true] %s15_s10 }
   0x4   :  { %p273_p1 = scmp.lt.u32.totalorder %s269_s13, %s399_s0 }
   0x6   :  { %p275_p2 = pnand %p273_p1, %p270_p0 }
   0x8   :  { %278 = shalt.err (!%p275_p2)
}
   0x9   :  { %s279_s18 = scalar_lea.vmem %s16_s10, 1024  ;;  %p284_p4 = scmp.lt.s32.totalorder %s16_s10, %s16_s10 }
   0xa   :  { %p280_p3 = scmp.ne.s32.totalorder %s16_s10, %s279_s18  ;;  %p285_p5 = scmp.lt.s32.totalorder %s279_s18, %s279_s18 }
   0xc   :  { %p286_p6 = por %p285_p5, %p284_p4 }
   0xe   :  { %p287_p7 = pnand %p286_p6, %p280_p3 }
  0x10   :  { %290 = shalt.err (!%p287_p7)
}
  0x11   :  { %s342_s19 = smov 512   ;;  %s343_s20 = smov 32  }
  0x12   :  { %21 = dma.hbm_to_vmem [thread:$0]  %s399_s0, 1024, %s16_s10, [#allocation3], %s342_s19, %s342_s19, %s343_s20  }
  0x13   :  { %s344_s23 = smov [#allocation5]   ;;  %s291_s27 = scalar_lea.hbm %s400_s1, 64 }
  0x14   :  { %s28_s24 = sshll.u32 %s344_s23, 4  ;;  %p292_p8 = scmp.ne.s32.totalorder %s400_s1, %s291_s27  ;;  %s29_s24 = int_to_ptr.vmem [resolvable:$true] %s28_s24 }
  0x15   :  { %p295_p9 = scmp.lt.u32.totalorder %s291_s27, %s400_s1 }
  0x17   :  { %p297_p10 = pnand %p295_p9, %p292_p8 }
  0x19   :  { %300 = shalt.err (!%p297_p10)
}
  0x1a   :  { %s301_s4 = scalar_lea.vmem %s29_s24, 64  ;;  %p306_p12 = scmp.lt.s32.totalorder %s29_s24, %s29_s24 }
  0x1b   :  { %p302_p11 = scmp.ne.s32.totalorder %s29_s24, %s301_s4  ;;  %p307_p13 = scmp.lt.s32.totalorder %s301_s4, %s301_s4 }
  0x1d   :  { %p308_p0 = por %p307_p13, %p306_p12 }
  0x1f   :  { %p309_p1 = pnand %p308_p0, %p302_p11 }
  0x21   :  { %312 = shalt.err (!%p309_p1)
}
  0x22   :  { %31 = dma.hbm_to_vmem [thread:$0]  %s400_s1, 64, %s29_s24, [#allocation6]  }
  0x23   :  { %335 = dma.done.wait [#allocation3], 1024  }
  0x24   :  { %336 = vsyncadd [#allocation3], 4294966272 }
  0x25   :  { %337 = dma.done.wait [#allocation6], 64  }
  0x26   :  { %338 = vsyncadd [#allocation6], 4294967232  ;;  %v47_v0 = vlaneseq  ;;  %v38_v2 = vld [vmem:[#allocation2] sm:$0xff]  ;;  %vm82_vm2 = vcmask 1041408   ;;  %v345_v31 = vmov 1966171168  }
  0x27   :  { %v42_v3 = vld [vmem:[#allocation2 + $0x20] sm:$0x3]  ;;  %v115_v4 = vsub.f32 0.0, %v38_v2  ;;  %v213_v32 = vunpack.c.l.s4 %v345_v31  ;;  %v346_v39 = vmov 0.0   ;;  %s347_s1 = smov [#allocation7]  }
  0x28   :  { %v48_v1 = vshrl.u32 %v47_v0, 7  ;;  %v119_v5 = vsub.f32 0.0, %v42_v3  ;;  %v46_v7 = vld [vmem:[#allocation5] sm:$0xf]  ;;  %v188_v34 = vand.u32 127, %v47_v0  ;;  %v211_v40 = vcombine.low %v346_v39, %v346_v39  ;;  %s246_s6 = sshll.u32 %s347_s1, 4  ;;  %s247_s6 = int_to_ptr.vmem [resolvable:$true] %s246_s6 }
  0x29   :  { %v123_v8 = vmul.f32 1.442695, %v115_v4  ;;  %v214_v35 = vunpack.c.0.s8 %v213_v32  ;;  %vm237_vm4 = vcmp.lt.s32.totalorder %v47_v0, 512  ;;  %s313_s7 = scalar_lea.vmem %s247_s6, 64  ;;  %p318_p3 = scmp.lt.s32.totalorder %s247_s6, %s247_s6 }
  0x2a   :  { %v52_v6 = vsub.s32 0, %v48_v1  ;;  %v131_v9 = vmul.f32 1.442695, %v119_v5  ;;  %v49_v10 = vadd.s32 8, %v48_v1  ;;  %vm198_vm3 = vcmp.lt.s32.totalorder %v188_v34, 8  ;;  %p314_p2 = scmp.ne.s32.totalorder %s247_s6, %s313_s7  ;;  %p319_p4 = scmp.lt.s32.totalorder %s313_s7, %s313_s7 }
  0x2b   :  { %263 = vpow2.f32 %v123_v8  ;;  %v217_v41 = vsub.s32 %v214_v35, %v48_v1 }
  0x2c   :  { %v53_v11 = vrot.slane %v46_v7, %v52_v6  ;;  %265 = vpow2.f32 %v131_v9  ;;  %p320_p5 = por %p319_p4, %p318_p3 }
  0x2d   :  { %v225_v45 = vrot.slane %v211_v40, %v217_v41 }
  0x2e   :  { %vm70_vm0 = vcmp.eq.s32.totalorder %v49_v10, %v53_v11  ;;  %vm66_vm1 = vcmp.eq.s32.totalorder %v48_v1, %v53_v11  ;;  %p321_p6 = pnand %p320_p5, %p314_p2 }
  0x2f   :  { %v78_v12 = vsel %vm70_vm0, %v42_v3, 0.0  ;;  %v74_v15 = vsel %vm66_vm1, %v38_v2, 0.0 }
  0x30   :  { %v83_v16 = vsel %vm82_vm2, %v78_v12, 0.0 }
  0x31   :  { %v84_v19 = vadd.f32 %v83_v16, %v74_v15 }
  0x33   :  { %v85_v22 = vrot.slane %v84_v19, 4 }
  0x35   :  { %v264_v13 = vpop.eup %263  ;;  %v86_v25 = vadd.f32 %v85_v22, %v84_v19 }
  0x36   :  { %v266_v14 = vpop.eup %265 }
  0x37   :  { %v139_v17 = vsel %vm82_vm2, %v266_v14, 0.0  ;;  %v87_v28 = vrot.slane %v86_v25, 2 }
  0x38   :  { %v140_v18 = vadd.f32 %v264_v13, %v139_v17 }
  0x39   :  { %v88_v30 = vadd.f32 %v87_v28, %v86_v25 }
  0x3a   :  { %v141_v20 = vrot.slane %v140_v18, 4 }
  0x3b   :  { %v89_v33 = vrot.slane %v88_v30, 1 }
  0x3c   :  { %v142_v21 = vadd.f32 %v141_v20, %v140_v18 }
  0x3d   :  { %v90_v36 = vadd.f32 %v89_v33, %v88_v30 }
  0x3e   :  { %v143_v23 = vrot.slane %v142_v21, 2 }
  0x40   :  { %v144_v24 = vadd.f32 %v143_v23, %v142_v21 }
  0x42   :  { %v145_v26 = vrot.slane %v144_v24, 1 }
  0x44   :  { %v146_v27 = vadd.f32 %v145_v26, %v144_v24 }
  0x46   :  { %v171_v29 = vadd.f32 0.9048374, %v146_v27 }
  0x48   :  { %267 = vlog2.f32 %v171_v29 }
  0x52   :  { %v268_v37 = vpop.eup %267 }
  0x53   :  { %v176_v38 = vmul.f32 0.6931472, %v268_v37 }
  0x55   :  { %v183_v42 = vadd.f32 %v176_v38, %v90_v36 }
  0x57   :  { %v202_v43 = vsel %vm198_vm3, %v183_v42, 0.0 }
  0x58   :  { %v210_v44 = vcombine.low %v202_v43, %v346_v39 }
  0x5a   :  { %v218_v46 = vrot.slane %v210_v44, %v217_v41 }
  0x5c   :  { %v226_v47 = vcombine.low %v218_v46, %v225_v45 }
  0x5e   :  { %v233_v48 = vrot.slane %v226_v47, %v217_v41 }
  0x60   :  { %239 = vst.msk [vmem:[#allocation7] sm:$0xf] %vm237_vm4, %v233_v48 }
  0x61   :  { %324 = shalt.err (!%p321_p6)
}
  0x62   :  { %s325_s10 = scalar_lea.hbm %s401_s2, 64 }
  0x63   :  { %p326_p7 = scmp.ne.s32.totalorder %s401_s2, %s325_s10  ;;  %p329_p8 = scmp.lt.u32.totalorder %s325_s10, %s401_s2 }
  0x65   :  { %p331_p9 = pnand %p329_p8, %p326_p7 }
  0x67   :  { %334 = shalt.err (!%p331_p9)
}
  0x68   :  { %249 = dma.vmem_to_hbm [thread:$0]  %s247_s6, 64, %s401_s2, [#allocation4]  }
  0x69   :  { %339 = dma.done.wait [#allocation4], 64  }
  0x6a   :  { %340 = vsyncadd [#allocation4], 4294967232 }
  0x6b   :  { %253 = vsyncpa [#allocation3], 1 }
  0x6c   :  { %254 = vsyncpa [#allocation6], 1 }
  0x6d   :  { %255 = vsyncpa [#allocation4], 1 }

</bundles_post_ra>
